<compile_context>
chip_gen: v6e
topology: v6e:2x2x1
jax: 0.10.0
libtpu: 0.0.40
codegen_flags: <defaults>
</compile_context>

<pallas_src>
import jax
import jax.numpy as jnp
from jax import lax
from jax.experimental import pallas as pl
from jax.experimental.pallas import tpu as pltpu

LINEAR_SIZE = 64


def _round_up(n: int, m: int) -> int:
    return ((n + m - 1) // m) * m


def quine_mlp_kernel(x_ref, w1_ref, b1_ref, w2_ref, w3_ref, o_ref):
    # Cast the x tile to bf16 in VMEM (VPU work, hidden under the x DMA on a
    # memory-bound kernel); HBM only ever sees the caller's dtype.
    x = x_ref[...].astype(jnp.bfloat16)

    # Layer 1: (tm, 128) @ (128, 64) on the MXU, bf16 operands, f32 accum.
    h = jnp.dot(x, w1_ref[...], preferred_element_type=jnp.float32)
    h = jnp.maximum(h + b1_ref[...], 0.0)          # bias + ReLU in f32 (VPU)

    # Layer 2: (tm, 64) @ (64, 64) on the MXU, bf16 operands, f32 accum.
    h = jnp.dot(h.astype(jnp.bfloat16), w2_ref[...],
                preferred_element_type=jnp.float32)
    h = jnp.maximum(h, 0.0)                        # ReLU in f32

    # Layer 3 (out_proj): contract the shared 64-wide feature dim of
    # w3 (1, 64) and h (tm, 64) -> (1, tm).  Same q.k^T contraction pattern
    # Mosaic handles natively on the MXU (no materialized h transpose); bf16
    # operands keep it single-pass and halve any layout traffic.  The
    # lane-dense (1, tm) row stores with a plain unmasked vst instead of a
    # (tm, 1) column of masked partial stores.
    y = lax.dot_general(w3_ref[...], h.astype(jnp.bfloat16),
                        dimension_numbers=(((1,), (1,)), ((), ())),
                        preferred_element_type=jnp.float32)
    o_ref[...] = y.astype(o_ref.dtype)


def quine_onehot_matrix_net(x, w1, b1, w2, w3, *, tm=8192):
    """Fused 3-layer MLP forward. Returns (B, 1) in x.dtype."""
    B, D_in = x.shape
    L = w1.shape[1]
    assert D_in == 2 * L
    out_dtype = x.dtype

    # Batch tile: multiple of 128 (lane-dense output row), capped to what the
    # batch needs.  When there is enough batch, keep >= 2 grid steps so the
    # "parallel" axis can shard across v7x's two TensorCores.
    b_aligned = _round_up(B, 128)
    tm_eff = max(128, min(tm, b_aligned))
    if b_aligned >= 256:
        tm_eff = min(tm_eff, _round_up(b_aligned // 2, 128))
    num_tiles = pl.cdiv(B, tm_eff)
    b_out = num_tiles * tm_eff        # pad only the (tiny) output row

    # Weights are tiny: cast once, resident in VMEM for every grid step.
    w1c = w1.astype(jnp.bfloat16)                    # (128, 64)
    w2c = w2.astype(jnp.bfloat16)                    # (64, 64)
    b1f = b1.reshape(1, L).astype(jnp.float32)       # elementwise math in f32
    w3r = w3.reshape(1, L).astype(jnp.bfloat16)      # row layout for layer 3

    flops = 2 * B * (D_in * L + L * L + L)
    bytes_accessed = (
        x.size * x.dtype.itemsize
        + w1c.size * 2 + w2c.size * 2 + w3r.size * 2 + b1f.size * 4
        + b_out * 4
    )

    out_row = pl.pallas_call(
        quine_mlp_kernel,
        out_shape=jax.ShapeDtypeStruct((1, b_out), jnp.float32),
        grid_spec=pltpu.PrefetchScalarGridSpec(
            num_scalar_prefetch=0,
            grid=(num_tiles,),
            in_specs=[
                pl.BlockSpec((tm_eff, D_in), lambda i: (i, 0)),   # x tile
                pl.BlockSpec((D_in, L), lambda i: (0, 0)),        # w1 (resident)
                pl.BlockSpec((1, L), lambda i: (0, 0)),           # b1
                pl.BlockSpec((L, L), lambda i: (0, 0)),           # w2
                pl.BlockSpec((1, L), lambda i: (0, 0)),           # w3 row
            ],
            out_specs=pl.BlockSpec((1, tm_eff), lambda i: (0, i)),  # lane-dense
        ),
        compiler_params=pltpu.CompilerParams(
            dimension_semantics=("parallel",),         # shard tiles across TCs
            vmem_limit_bytes=48 * 1024 * 1024,         # > v5e's 16 MiB default
        ),
        cost_estimate=pl.CostEstimate(flops=flops, transcendentals=0,
                                      bytes_accessed=bytes_accessed),
    )(x, w1c, b1f, w2c, w3r)

    return out_row[0, :B].reshape(B, 1).astype(out_dtype)


def reference_forward(x, w1, b1, w2, w3):
    h = jnp.maximum(x @ w1 + b1.reshape(1, -1), 0.0)
    h = jnp.maximum(h @ w2, 0.0)
    return h @ w3


if __name__ == "__main__":
    key = jax.random.PRNGKey(0)
    k_x, k_w1, k_b1, k_w2, k_w3 = jax.random.split(key, 5)

    B = 200                      # ragged: exercises multi-tile + partial tile
    L = LINEAR_SIZE

    # Deterministic synthetic parameters (mimic PyTorch Linear init scale).
    x = jax.random.normal(k_x, (B, 2 * L), dtype=jnp.float32)
    w1 = jax.random.uniform(k_w1, (2 * L, L), dtype=jnp.float32,
                            minval=-1.0, maxval=1.0) / jnp.sqrt(2.0 * L)
    b1 = jax.random.uniform(k_b1, (1, L), dtype=jnp.float32,
                            minval=-1.0, maxval=1.0) / jnp.sqrt(2.0 * L)
    w2 = jax.random.uniform(k_w2, (L, L), dtype=jnp.float32,
                            minval=-1.0, maxval=1.0) / jnp.sqrt(float(L))
    w3 = jax.random.uniform(k_w3, (L, 1), dtype=jnp.float32,
                            minval=-1.0, maxval=1.0) / jnp.sqrt(float(L))

    out = quine_onehot_matrix_net(x, w1, b1, w2, w3)
    out = jax.block_until_ready(out)

    ref = reference_forward(x, w1, b1, w2, w3)
    assert out.shape == (B, 1), out.shape
    # bf16 matmul operands -> loosened tolerance vs the f32 reference.
    max_err = float(jnp.max(jnp.abs(out - ref)))
    assert jnp.allclose(out, ref, atol=5e-2, rtol=5e-2), f"max err {max_err}"

    print("KERNEL_OK")
</pallas_src>

<mosaic_0001>
module attributes {stable_mosaic.version = 11 : i64} {
  func.func @quine_mlp_kernel(%arg0: i32, %arg1: memref<128x128xf32, #tpu.memory_space<vmem>>, %arg2: memref<128x64xbf16, #tpu.memory_space<vmem>>, %arg3: memref<1x64xf32, #tpu.memory_space<vmem>>, %arg4: memref<64x64xbf16, #tpu.memory_space<vmem>>, %arg5: memref<1x64xbf16, #tpu.memory_space<vmem>>, %arg6: memref<1x128xf32, #tpu.memory_space<vmem>>) attributes {dimension_semantics = [#tpu.dimension_semantics<parallel>], iteration_bounds = array<i64: 2>, scalar_prefetch = 0 : i64, scratch_operands = 0 : i64, tpu.core_type = #tpu.core_type<tc>, window_params = [{transform_indices = @transform_0, window_bounds = array<i64: 128, 128>}, {pipeline_mode = #tpu.pipeline_mode<synchronous>, transform_indices = @transform_1, window_bounds = array<i64: 128, 64>}, {pipeline_mode = #tpu.pipeline_mode<synchronous>, transform_indices = @transform_2, window_bounds = array<i64: 1, 64>}, {pipeline_mode = #tpu.pipeline_mode<synchronous>, transform_indices = @transform_3, window_bounds = array<i64: 64, 64>}, {pipeline_mode = #tpu.pipeline_mode<synchronous>, transform_indices = @transform_4, window_bounds = array<i64: 1, 64>}, {transform_indices = @transform_5, window_bounds = array<i64: 1, 128>}]} {
    %c0 = arith.constant 0 : index
    %c0_0 = arith.constant 0 : index
    %0 = vector.load %arg1[%c0, %c0_0] : memref<128x128xf32, #tpu.memory_space<vmem>>, vector<128x128xf32>
    %1 = arith.truncf %0 : vector<128x128xf32> to vector<128x128xbf16>
    %c0_1 = arith.constant 0 : index
    %c0_2 = arith.constant 0 : index
    %2 = vector.load %arg2[%c0_1, %c0_2] : memref<128x64xbf16, #tpu.memory_space<vmem>>, vector<128x64xbf16>
    %cst = arith.constant dense<0.000000e+00> : vector<128x64xf32>
    %3 = tpu.matmul %1, %2, %cst {dimension_numbers = #tpu.dot_dimension_numbers<[1], [0], [0], [1], [0, 0, 1, 1], [], []>} : vector<128x128xbf16>, vector<128x64xbf16>, vector<128x64xf32> -> vector<128x64xf32>
    %c0_3 = arith.constant 0 : index
    %c0_4 = arith.constant 0 : index
    %4 = vector.load %arg3[%c0_3, %c0_4] : memref<1x64xf32, #tpu.memory_space<vmem>>, vector<1x64xf32>
    %5 = vector.broadcast %4 : vector<1x64xf32> to vector<128x64xf32>
    %6 = arith.addf %3, %5 : vector<128x64xf32>
    %cst_5 = arith.constant 0.000000e+00 : f32
    %7 = vector.broadcast %cst_5 : f32 to vector<128x64xf32>
    %8 = arith.maximumf %6, %7 : vector<128x64xf32>
    %9 = arith.truncf %8 : vector<128x64xf32> to vector<128x64xbf16>
    %c0_6 = arith.constant 0 : index
    %c0_7 = arith.constant 0 : index
    %10 = vector.load %arg4[%c0_6, %c0_7] : memref<64x64xbf16, #tpu.memory_space<vmem>>, vector<64x64xbf16>
    %cst_8 = arith.constant dense<0.000000e+00> : vector<128x64xf32>
    %11 = tpu.matmul %9, %10, %cst_8 {dimension_numbers = #tpu.dot_dimension_numbers<[1], [0], [0], [1], [0, 0, 1, 1], [], []>} : vector<128x64xbf16>, vector<64x64xbf16>, vector<128x64xf32> -> vector<128x64xf32>
    %cst_9 = arith.constant 0.000000e+00 : f32
    %12 = vector.broadcast %cst_9 : f32 to vector<128x64xf32>
    %13 = arith.maximumf %11, %12 : vector<128x64xf32>
    %c0_10 = arith.constant 0 : index
    %c0_11 = arith.constant 0 : index
    %14 = vector.load %arg5[%c0_10, %c0_11] : memref<1x64xbf16, #tpu.memory_space<vmem>>, vector<1x64xbf16>
    %15 = arith.truncf %13 : vector<128x64xf32> to vector<128x64xbf16>
    %cst_12 = arith.constant dense<0.000000e+00> : vector<1x128xf32>
    %16 = tpu.matmul %14, %15, %cst_12 {dimension_numbers = #tpu.dot_dimension_numbers<[1], [1], [0], [0], [0, 0, 1, 0], [], []>} : vector<1x64xbf16>, vector<128x64xbf16>, vector<1x128xf32> -> vector<1x128xf32>
    %c0_13 = arith.constant 0 : index
    %c0_14 = arith.constant 0 : index
    %17 = vector.load %arg6[%c0_13, %c0_14] : memref<1x128xf32, #tpu.memory_space<vmem>>, vector<1x128xf32>
    tpu.vector_store %arg6[%c0_13, %c0_14], %16 {strides = array<i32>} : memref<1x128xf32, #tpu.memory_space<vmem>>, vector<1x128xf32>,
    return
  }
  func.func @transform_0(%arg0: i32) -> (i32, i32) {
    %c0_i32 = arith.constant 0 : i32
    %c0_i32_0 = arith.constant 0 : i32
    return %arg0, %c0_i32 : i32, i32
  }
  func.func @transform_1(%arg0: i32) -> (i32, i32) {
    %c0_i32 = arith.constant 0 : i32
    %c0_i32_0 = arith.constant 0 : i32
    %c0_i32_1 = arith.constant 0 : i32
    return %c0_i32, %c0_i32_0 : i32, i32
  }
  func.func @transform_2(%arg0: i32) -> (i32, i32) {
    %c0_i32 = arith.constant 0 : i32
    %c0_i32_0 = arith.constant 0 : i32
    %c0_i32_1 = arith.constant 0 : i32
    return %c0_i32, %c0_i32_0 : i32, i32
  }
  func.func @transform_3(%arg0: i32) -> (i32, i32) {
    %c0_i32 = arith.constant 0 : i32
    %c0_i32_0 = arith.constant 0 : i32
    %c0_i32_1 = arith.constant 0 : i32
    return %c0_i32, %c0_i32_0 : i32, i32
  }
  func.func @transform_4(%arg0: i32) -> (i32, i32) {
    %c0_i32 = arith.constant 0 : i32
    %c0_i32_0 = arith.constant 0 : i32
    %c0_i32_1 = arith.constant 0 : i32
    return %c0_i32, %c0_i32_0 : i32, i32
  }
  func.func @transform_5(%arg0: i32) -> (i32, i32) {
    %c0_i32 = arith.constant 0 : i32
    %c0_i32_0 = arith.constant 0 : i32
    return %c0_i32, %arg0 : i32, i32
  }
}

</mosaic_0001>

<bundles_post_ra>
// kernel: tpu_custom_call.1
= control target key start
LH: loop header
LB: loop body
LE: loop exit
PB: predicated region body
PF: predicated region fallthrough
CT: control target
= control target key end

     0   :  { %10 = vsyncpa [#allocation3], 0  ;;  %s1372_s0 = inlined_call_operand.hbm [shape: f32[200,128], index: 0, kind: input, shape index: {}]   ;;  %s1373_s1 = inlined_call_operand.vmem [shape: bf16[128,64], index: 1, kind: input, shape index: {}]   ;;  %s1374_s2 = inlined_call_operand.vmem [shape: f32[1,64], index: 2, kind: input, shape index: {}]   ;;  %s1375_s3 = inlined_call_operand.vmem [shape: bf16[64,64], index: 3, kind: input, shape index: {}]   ;;  %s1376_s4 = inlined_call_operand.vmem [shape: bf16[1,64], index: 4, kind: input, shape index: {}]   ;;  %s1377_s5 = inlined_call_operand.hbm [shape: f32[1,256], index: 5, kind: output, shape index: {}]  }
   0x1   :  { %12 = vsyncpa [#allocation3 + $0x1], 0 }
   0x2   :  { %13 = vsyncpa [#allocation4], 0 }
   0x3   :  { %15 = vsyncpa [#allocation4 + $0x1], 0  ;;  %s1131_s18 = smov 0   ;;  %s1133_s19 = smov 0  }
   0x4   :  { %s1135_s20 = smov 0   ;;  %s1137_s21 = smov 0  }
   0x5 LB: > { %s1152_s22 = sadd.s32 4294967295, %s1093_s21   ;;  %s796_s23 = sadd.s32 4294967294, %s1093_s21   ;;  %s1093_s21 = sphi %s1137_s21, %s1387_s21   ;;  %s1089_s20 = sphi %s1135_s20, %s1386_s20   ;;  %s1085_s19 = sphi %s1133_s19, %s1385_s19   ;;  %s1081_s18 = sphi %s1131_s18, %s1384_s18  }
   0x6   : > { %s1156_s24 = sadd.s32 1, %s1093_s21   ;;  %s28_s25 = sadd.s32 1, %s1089_s20 }
   0x7   : > { %s25_s26 = ssub.s32 %s1093_s21, %s1156_s24  ;;  %p35_p0 = scmp.ne.s32.totalorder %s1089_s20, %s1085_s19 }
   0x8   : > { %p26_p1 = scmp.eq.s32.totalorder %s25_s26, 0  ;;  %p36_p2 = scmp.eq.s32.totalorder %s1093_s21, 0 }
   0x9   : > { %p41_p3 = scmp.ne.s32.totalorder %s1085_s19, %s1081_s18  ;;  %p42_p4 = scmp.eq.s32.totalorder %s1152_s22, 0 }
   0xa   : > { %s1168_s27 = scalar_select %p26_p1, %s1089_s20, %s28_s25  }
   0xb   : > { %p37_p5 = por %p36_p2, %p35_p0  ;;  %p1170_p6 = por %p42_p4, %p41_p3 }
   0xc   : > { %p149_p7 = scmp.eq.s32.totalorder %s1152_s22, 1  ;;  %p155_p8 = scmp.eq.s32.totalorder %s796_s23, 1 }
   0xd   : > { %p1378_p11 = scmp.ge.s32.totalorder %s1093_s21, 2 }
   0xe   : > { %p1175_p9 = por %p149_p7, %p35_p0  ;;  %p1179_p10 = por %p155_p8, %p41_p3 }
   0xf   : > { %183 = sbr.rel (%p1378_p11) target bundleno = 52 (0x34), region = 32 }
  0x10   : > { %s1381_s30 = scalar_select %p1179_p10, 1, 0 }
  0x14   : > { %186 = sbr.rel (!%p37_p5) target bundleno = 52 (0x34), region = 36  ;;  %s187_s6 = sand.u32 (%p37_p5), 1, %s1089_s20  }
  0x15   : > { %s800_s7 = sshll.u32 (%p37_p5), %s1093_s21, 4  ;;  %s799_s8 = sshll.u32 (%p37_p5), %s187_s6, 7 }
  0x16   : > { %s193_s9 = ssub.s32 (%p37_p5), 25, %s800_s7  ;;  %s1191_s12 = scalar_lea.sflag (%p37_p5), [#allocation3], %s187_s6 }
  0x17   : > { %p194_p12 = scmp.lt.s32.totalorder (%p37_p5), %s193_s9, 16  ;;  %s191_s13 = scalar_lea.vmem (%p37_p5), [#allocation2], %s799_s8 }
  0x19   : > { %s1389_s9 = smov (!%p194_p12, %s193_s9), 16 }
  0x1a   : > { %s1188_s10 = sshll.u32 %s1389_s9, 7 }
  0x1b   : > { %s198_s11 = ssub.s32 2048, %s1188_s10 }
  0x1c   : > { %199 = vsyncadd %s1191_s12, %s198_s11  ;;  %p802_p13 = scmp.ne.s32.totalorder %s1188_s10, 0  ;;  %s833_s14 = sshll.u32 %s1093_s21, 11 }
  0x1d   : > { %s1199_s17 = scalar_lea.hbm %s1372_s0, %s833_s14  ;;  %s204_s23 = sshll.u32 %s191_s13, 4  ;;  %s1201_s23 = int_to_ptr.vmem [resolvable:$true] %s204_s23 }
  0x1e   : > { %s1003_s25 = scalar_lea.hbm %s1199_s17, %s1188_s10  ;;  %s1007_s7 = scalar_lea.hbm %s1372_s0, 3200 }
  0x1f   : > { %p1004_p0 = scmp.ne.s32.totalorder %s1199_s17, %s1003_s25  ;;  %p1008_p3 = scmp.lt.s32.totalorder %s1199_s17, %s1372_s0 }
  0x20   : > { %p1009_p4 = scmp.lt.s32.totalorder %s1007_s7, %s1003_s25 }
  0x21   : > { %p1005_p1 = pnand %p1004_p0, %p802_p13 }
  0x22   : > { %p1010_p5 = por %p1009_p4, %p1008_p3 }
  0x23   : > { %p1006_p2 = pneg %p1005_p1 }
  0x25   : > { %p1011_p7 = pnand %p1010_p5, %p1006_p2 }
  0x27   : > { %1014 = shalt.err (!%p1011_p7)
}
  0x28   : > { %s1015_s11 = scalar_lea.vmem %s1201_s23, %s1188_s10  ;;  %s1095_s13 = smov [#allocation2]  }
  0x29   : > { %p1016_p8 = scmp.ne.s32.totalorder %s1201_s23, %s1015_s11  ;;  %s1019_s14 = sshll.u32 %s1095_s13, 4  ;;  %s1020_s14 = int_to_ptr.vmem [resolvable:$false] %s1019_s14 }
  0x2a   : > { %s1021_s15 = scalar_lea.vmem %s1020_s14, 4096  ;;  %p1022_p1 = scmp.lt.s32.totalorder %s1201_s23, %s1020_s14 }
  0x2b   : > { %p1017_p12 = pnand %p1016_p8, %p802_p13  ;;  %p1023_p11 = scmp.lt.s32.totalorder %s1021_s15, %s1015_s11 }
  0x2d   : > { %p1018_p0 = pneg %p1017_p12  ;;  %p1024_p10 = por %p1023_p11, %p1022_p1 }
  0x2f   : > { %p1025_p3 = pnand %p1024_p10, %p1018_p0 }
  0x31   : > { %1028 = shalt.err (!%p1025_p3)
}
  0x32   : > { %s1096_s16 = smov 128   ;;  %s1097_s25 = smov 8  }
  0x33   : > { %210 = dma.hbm_to_vmem [thread:$0]  (%p802_p13), %s1199_s17, %s1188_s10, %s1201_s23, %s1191_s12, %s1096_s16, %s1096_s16, %s1097_s25  }
  0x34 PF: > { %p806_p2 = scmp.ge.s32.totalorder %s1093_s21, 1  ;;  %p212_p4 = scmp.lt.s32.totalorder %s1093_s21, 3 }
  0x36   : > { %p213_p5 = pnand %p806_p2, %p212_p4 }
  0x37   : > { %s1230_s26 = sand.u32 (!%p213_p5), 1, %s1085_s19  }
  0x38   : > { %216 = sbr.rel (%p213_p5) target bundleno = 799 (0x31f), region = 40  ;;  %s807_s6 = sshll.u32 (!%p213_p5), %s1230_s26, 7 }
  0x39   : > { %s219_s7 = scalar_lea.sflag (!%p213_p5), [#allocation3], %s1230_s26  ;;  %s1234_s8 = scalar_lea.vmem (!%p213_p5), [#allocation2], %s807_s6 }
  0x3d   : > { %1072 = dma.done.wait (%p1170_p6), %s219_s7, 2048  }
  0x3e   : > { %1074 = vsyncadd (%p1170_p6), %s219_s7, 4294965248  ;;  %v991_v0 = vld [vmem:[%s1373_s1 + $0x38] sm:$0xff]   ;;  %v992_v1 = vld [vmem:[%s1373_s1 + $0x30] sm:$0xff]   ;;  %vm502_vm0 = vcmask 523264   ;;  %vm1099_vm1 = vmmov 0   ;;  %s247_s7 = scalar_lea.vmem [#allocation5], %s1230_s26 }
  0x3f   : > { %871 = vmatprep.subr.bf16.mxu0 %v991_v0  ;;  %v993_v2 = vld [vmem:[%s1373_s1 + $0x28] sm:$0xff]   ;;  %v994_v3 = vld [vmem:[%s1373_s1 + $0x20] sm:$0xff]   ;;  %v995_v7 = vld [vmem:[%s1373_s1 + $0x18] sm:$0xff]   ;;  %s730_s10 = sshll.u32 %s247_s7, 4  ;;  %s830_s12 = sshll.u32 %s1152_s22, 4  ;;  %s1326_s10 = int_to_ptr.vmem [resolvable:$true] %s730_s10 }
  0x40   : > { %872 = vmatpush3.bf16.msra.mxu0 %v991_v0  ;;  %v254_v4 = vld [vmem:[%s1234_s8] sm:$0xff]  ;;  %v255_v5 = vld [vmem:[%s1234_s8 + $0x8] sm:$0xff]  ;;  %v999_v8 = vld [vmem:[%s1375_s3 + $0x18] sm:$0xff]   ;;  %s1331_s9 = scalar_lea.hbm %s1377_s5, %s830_s12  ;;  %s718_s11 = scalar_lea.sflag [#allocation4], %s1230_s26 }
  0x41   : > { %873 = vmatprep.subr.bf16.mxu0 %v992_v1  ;;  %v270_v6 = vpack.c.bf16 %v255_v5, %v254_v4  ;;  %v996_v9 = vld [vmem:[%s1373_s1 + $0x10] sm:$0xff]   ;;  %903 = vmatprep.subr.bf16.mxu1 %v999_v8  ;;  %v997_v10 = vld [vmem:[%s1373_s1 + $0x8] sm:$0xff]   ;;  %v998_v11 = vld [vmem:[%s1373_s1] sm:$0xff]   ;;  %s1029_s28 = scalar_lea.vmem %s1326_s10, 16  ;;  %s1100_s22 = smov [#allocation5]  }
  0x42   : > { %904 = vmatpush3.bf16.msra.mxu1 %v999_v8  ;;  %v256_v12 = vld [vmem:[%s1234_s8 + $0x10] sm:$0xff]  ;;  %v257_v13 = vld [vmem:[%s1234_s8 + $0x18] sm:$0xff]  ;;  %v258_v14 = vld [vmem:[%s1234_s8 + $0x20] sm:$0xff]  ;;  %p1030_p6 = scmp.ne.s32.totalorder %s1326_s10, %s1029_s28  ;;  %s1033_s13 = sshll.u32 %s1100_s22, 4  ;;  %s1034_s13 = int_to_ptr.vmem [resolvable:$false] %s1033_s13 }
  0x43   : > { %887 = vmatprep.mubr.bf16.mxu0 %v270_v6  ;;  %v259_v15 = vld [vmem:[%s1234_s8 + $0x28] sm:$0xff]  ;;  %v271_v16 = vpack.c.bf16 %v257_v13, %v256_v12  ;;  %v260_v18 = vld [vmem:[%s1234_s8 + $0x30] sm:$0xff]  ;;  %v261_v19 = vld [vmem:[%s1234_s8 + $0x38] sm:$0xff]  ;;  %s1035_s14 = scalar_lea.vmem %s1034_s13, 32  ;;  %p1036_p13 = scmp.lt.s32.totalorder %s1326_s10, %s1034_s13 }
  0x44   : > { %874 = vmatpush3.bf16.msra.mxu0 %v992_v1  ;;  %v272_v17 = vpack.c.bf16 %v259_v15, %v258_v14  ;;  %v262_v20 = vld [vmem:[%s1234_s8 + $0x40] sm:$0xff]  ;;  %v263_v21 = vld [vmem:[%s1234_s8 + $0x48] sm:$0xff]  ;;  %v273_v22 = vpack.c.bf16 %v261_v19, %v260_v18  ;;  %v264_v24 = vld [vmem:[%s1234_s8 + $0x50] sm:$0xff]  ;;  %p1031_p10 = pnand %p1030_p6, %p1175_p9  ;;  %p1037_p7 = scmp.lt.s32.totalorder %s1035_s14, %s1029_s28 }
  0x45   : > { %875 = vmatprep.subr.bf16.mxu0 %v993_v2  ;;  %v274_v23 = vpack.c.bf16 %v263_v21, %v262_v20  ;;  %v265_v25 = vld [vmem:[%s1234_s8 + $0x58] sm:$0xff]  ;;  %v266_v26 = vld [vmem:[%s1234_s8 + $0x60] sm:$0xff]  ;;  %v267_v27 = vld [vmem:[%s1234_s8 + $0x68] sm:$0xff] }
  0x46   : > { %v275_v28 = vpack.c.bf16 %v265_v25, %v264_v24  ;;  %v276_v29 = vpack.c.bf16 %v267_v27, %v266_v26  ;;  %v268_v30 = vld [vmem:[%s1234_s8 + $0x70] sm:$0xff]  ;;  %v269_v31 = vld [vmem:[%s1234_s8 + $0x78] sm:$0xff]  ;;  %v1001_v34 = vld [vmem:[%s1375_s3 + $0x8] sm:$0xff]   ;;  %p1032_p11 = pneg %p1031_p10  ;;  %p1038_p8 = por %p1037_p7, %p1036_p13 }
  0x47   : > { %v277_v32 = vpack.c.bf16 %v269_v31, %v268_v30  ;;  %v1000_v33 = vld [vmem:[%s1375_s3 + $0x10] sm:$0xff]   ;;  %v1002_v35 = vld [vmem:[%s1375_s3] sm:$0xff]  }
  0x48   : > { %876 = vmatpush3.bf16.msra.mxu0 %v993_v2  ;;  %905 = vmatprep.subr.bf16.mxu1 %v1000_v33  ;;  %v808_v38 = vld [vmem:[%s1374_s2] ss:$0 sm:$0xff]  ;;  %p1039_p12 = pnand %p1038_p8, %p1032_p11 }
  0x49   : > { %877 = vmatprep.subr.bf16.mxu0 %v994_v3  ;;  %906 = vmatpush3.bf16.msra.mxu1 %v1000_v33 }
  0x4a   : > { %907 = vmatprep.subr.bf16.mxu1 %v1001_v34 }
  0x4c   : > { %878 = vmatpush3.bf16.msra.mxu0 %v994_v3 }
  0x4d   : > { %879 = vmatprep.subr.bf16.mxu0 %v995_v7  ;;  %908 = vmatpush3.bf16.msra.mxu1 %v1001_v34 }
  0x4e   : > { %909 = vmatprep.subr.bf16.mxu1 %v1002_v35 }
  0x50   : > { %880 = vmatpush3.bf16.msra.mxu0 %v995_v7 }
  0x51   : > { %881 = vmatprep.subr.bf16.mxu0 %v996_v9  ;;  %910 = vmatpush3.bf16.msra.mxu1 %v1002_v35 }
  0x54   : > { %882 = vmatpush3.bf16.msra.mxu0 %v996_v9 }
  0x55   : > { %883 = vmatprep.subr.bf16.mxu0 %v997_v10 }
  0x58   : > { %884 = vmatpush3.bf16.msra.mxu0 %v997_v10 }
  0x59   : > { %885 = vmatprep.subr.bf16.mxu0 %v998_v11 }
  0x5c   : > { %886 = vmatpush3.bf16.msra.mxu0 %v998_v11 }
  0x5f   : > { %888 = vmatmul.mubr.bf16.vlgmr.msra.gmra.mxu0 %v271_v16 }
  0x60   : > { %891 = vmatprep.mubr.bf16.mxu0 %v272_v17 }
  0x67   : > { %892 = vmatmul.mubr.bf16.gmra.mxu0 %v273_v22 }
  0x68   : > { %895 = vmatprep.mubr.bf16.mxu0 %v274_v23 }
  0x6f   : > { %896 = vmatmul.mubr.bf16.gmra.mxu0 %v275_v28 }
  0x70   : > { %899 = vmatprep.mubr.bf16.mxu0 %v276_v29  ;;  %v1098_v29 = vmov 0.0  }
  0x71   : > { %927 = vmatprep.subr.bf16.mxu1 %v1098_v29 }
  0x77   : > { %900 = vmatmul.mubr.bf16.gmra.mxu0 %v277_v32 }
 0x11f   : > { %v889_v36 = vpop.f32.mrf.mxu0 }
 0x120   : > { %v392_v42 = vadd.f32 %v889_v36, %v808_v38 }
 0x121   : > { %v383_v37 = vpop.f32.mrf.mxu0 }
 0x122   : > { %v384_v40 = vadd.f32 %v808_v38, %v383_v37  ;;  %v448_v49 = vmax.f32 %v392_v42, 0.0 }
 0x123   : > { %v890_v39 = vpop.f32.mrf.mxu0 }
 0x124   : > { %v395_v41 = vadd.f32 %v890_v39, %v808_v38  ;;  %v446_v47 = vmax.f32 %v384_v40, 0.0 }
 0x125   : > { %v386_v43 = vpop.f32.mrf.mxu0 }
 0x126   : > { %v387_v44 = vadd.f32 %v808_v38, %v386_v43  ;;  %v449_v45 = vmax.f32 %v395_v41, 0.0 }
 0x127   : > { %v893_v46 = vpop.f32.mrf.mxu0 }
 0x128   : > { %v447_v48 = vmax.f32 %v387_v44, 0.0  ;;  %v463_v52 = vpack.c.bf16 %v449_v45, %v448_v49  ;;  %v408_v56 = vadd.f32 %v893_v46, %v808_v38 }
 0x129   : > { %v399_v50 = vpop.f32.mrf.mxu0 }
 0x12a   : > { %v462_v51 = vpack.c.bf16 %v447_v48, %v446_v47  ;;  %v400_v54 = vadd.f32 %v808_v38, %v399_v50  ;;  %v452_v63 = vmax.f32 %v408_v56, 0.0 }
 0x12b   : > { %v894_v53 = vpop.f32.mrf.mxu0 }
 0x12c   : > { %v411_v55 = vadd.f32 %v894_v53, %v808_v38  ;;  %911 = vmatprep.mubr.msk.bf16.mxu1 %vm502_vm0, %v462_v51  ;;  %v450_v61 = vmax.f32 %v400_v54, 0.0 }
 0x12d   : > { %v402_v57 = vpop.f32.mrf.mxu0  ;;  %912 = vmatmul.mubr.msk.bf16.vlgmr.msra.gmra.mxu1 %vm502_vm0, %v463_v52 }
 0x12e   : > { %v403_v58 = vadd.f32 %v808_v38, %v402_v57  ;;  %v453_v59 = vmax.f32 %v411_v55, 0.0 }
 0x12f   : > { %v897_v60 = vpop.f32.mrf.mxu0 }
 0x130   : > { %v451_v62 = vmax.f32 %v403_v58, 0.0  ;;  %v465_v2 = vpack.c.bf16 %v453_v59, %v452_v63  ;;  %v424_v6 = vadd.f32 %v897_v60, %v808_v38 }
 0x131   : > { %v415_v0 = vpop.f32.mrf.mxu0 }
 0x132   : > { %v464_v1 = vpack.c.bf16 %v451_v62, %v450_v61  ;;  %v416_v4 = vadd.f32 %v808_v38, %v415_v0  ;;  %v456_v13 = vmax.f32 %v424_v6, 0.0 }
 0x133   : > { %v898_v3 = vpop.f32.mrf.mxu0 }
 0x134   : > { %v427_v5 = vadd.f32 %v898_v3, %v808_v38  ;;  %915 = vmatprep.mubr.msk.bf16.mxu1 %vm502_vm0, %v464_v1  ;;  %v454_v11 = vmax.f32 %v416_v4, 0.0 }
 0x135   : > { %v418_v7 = vpop.f32.mrf.mxu0  ;;  %916 = vmatmul.mubr.msk.bf16.gmra.mxu1 %vm502_vm0, %v465_v2 }
 0x136   : > { %v419_v8 = vadd.f32 %v808_v38, %v418_v7  ;;  %v457_v9 = vmax.f32 %v427_v5, 0.0 }
 0x137   : > { %v901_v10 = vpop.f32.mrf.mxu0 }
 0x138   : > { %v455_v12 = vmax.f32 %v419_v8, 0.0  ;;  %v467_v16 = vpack.c.bf16 %v457_v9, %v456_v13  ;;  %v440_v20 = vadd.f32 %v901_v10, %v808_v38 }
 0x139   : > { %v431_v14 = vpop.f32.mrf.mxu0 }
 0x13a   : > { %v466_v15 = vpack.c.bf16 %v455_v12, %v454_v11  ;;  %v432_v18 = vadd.f32 %v808_v38, %v431_v14  ;;  %v460_v26 = vmax.f32 %v440_v20, 0.0  ;;  %v640_v14 = vld [vmem:[%s1376_s4] sm:$0x1] }
 0x13b   : > { %v902_v17 = vpop.f32.mrf.mxu0 }
 0x13c   : > { %v443_v19 = vadd.f32 %v902_v17, %v808_v38  ;;  %919 = vmatprep.mubr.msk.bf16.mxu1 %vm502_vm0, %v466_v15  ;;  %v458_v24 = vmax.f32 %v432_v18, 0.0 }
 0x13d   : > { %v434_v21 = vpop.f32.mrf.mxu0  ;;  %920 = vmatmul.mubr.msk.bf16.gmra.mxu1 %vm502_vm0, %v467_v16 }
 0x13e   : > { %v435_v22 = vadd.f32 %v808_v38, %v434_v21  ;;  %v461_v23 = vmax.f32 %v443_v19, 0.0 }
 0x140   : > { %v459_v25 = vmax.f32 %v435_v22, 0.0  ;;  %v469_v28 = vpack.c.bf16 %v461_v23, %v460_v26 }
 0x142   : > { %v468_v27 = vpack.c.bf16 %v459_v25, %v458_v24 }
 0x144   : > { %923 = vmatprep.mubr.msk.bf16.mxu1 %vm502_vm0, %v468_v27 }
 0x145   : > { %924 = vmatmul.mubr.msk.bf16.gmra.mxu1 %vm502_vm0, %v469_v28 }
 0x146   : > { %943 = vmatprep.mubr.msk.bf16.mxu1 %vm1099_vm1, %v1098_v29 }
 0x1ed   : > { %v913_v30 = vpop.f32.mrf.mxu1 }
 0x1ee   : > { %v626_v33 = vmax.f32 %v913_v30, 0.0 }
 0x1ef   : > { %v561_v31 = vpop.f32.mrf.mxu1 }
 0x1f0   : > { %v624_v36 = vmax.f32 %v561_v31, 0.0 }
 0x1f1   : > { %v914_v32 = vpop.f32.mrf.mxu1 }
 0x1f2   : > { %v627_v34 = vmax.f32 %v914_v32, 0.0 }
 0x1f3   : > { %v564_v35 = vpop.f32.mrf.mxu1 }
 0x1f4   : > { %v642_v37 = vpack.c.bf16 %v627_v34, %v626_v33  ;;  %v625_v38 = vmax.f32 %v564_v35, 0.0 }
 0x1f5   : > { %v917_v39 = vpop.f32.mrf.mxu1 }
 0x1f6   : > { %v641_v40 = vpack.c.bf16 %v625_v38, %v624_v36  ;;  %v630_v5 = vmax.f32 %v917_v39, 0.0  ;;  %v656_v12 = vsel %vm502_vm0, %v642_v37, 0 }
 0x1f7   : > { %v577_v41 = vpop.f32.mrf.mxu1 }
 0x1f8   : > { %v628_v9 = vmax.f32 %v577_v41, 0.0  ;;  %v653_v13 = vsel %vm502_vm0, %v641_v40, 0 }
 0x1f9   : > { %v918_v42 = vpop.f32.mrf.mxu1 }
 0x1fa   : > { %v631_v3 = vmax.f32 %v918_v42, 0.0 }
 0x1fb   : > { %v580_v43 = vpop.f32.mrf.mxu1 }
 0x1fc   : > { %v644_v6 = vpack.c.bf16 %v631_v3, %v630_v5  ;;  %v629_v7 = vmax.f32 %v580_v43, 0.0 }
 0x1fd   : > { %v921_v44 = vpop.f32.mrf.mxu1 }
 0x1fe   : > { %v634_v61 = vmax.f32 %v921_v44, 0.0  ;;  %v662_v8 = vsel %vm502_vm0, %v644_v6, 0  ;;  %v643_v10 = vpack.c.bf16 %v629_v7, %v628_v9 }
 0x1ff   : > { %v593_v45 = vpop.f32.mrf.mxu1 }
 0x200   : > { %v632_v1 = vmax.f32 %v593_v45, 0.0  ;;  %v659_v11 = vsel %vm502_vm0, %v643_v10, 0 }
 0x201   : > { %v922_v46 = vpop.f32.mrf.mxu1 }
 0x202   : > { %v635_v59 = vmax.f32 %v922_v46, 0.0 }
 0x203   : > { %v596_v47 = vpop.f32.mrf.mxu1 }
 0x204   : > { %v646_v62 = vpack.c.bf16 %v635_v59, %v634_v61  ;;  %v633_v63 = vmax.f32 %v596_v47, 0.0 }
 0x205   : > { %v925_v48 = vpop.f32.mrf.mxu1 }
 0x206   : > { %v638_v51 = vmax.f32 %v925_v48, 0.0  ;;  %v668_v0 = vsel %vm502_vm0, %v646_v62, 0  ;;  %v645_v2 = vpack.c.bf16 %v633_v63, %v632_v1 }
 0x207   : > { %v609_v49 = vpop.f32.mrf.mxu1 }
 0x208   : > { %v636_v57 = vmax.f32 %v609_v49, 0.0  ;;  %v665_v4 = vsel %vm502_vm0, %v645_v2, 0 }
 0x209   : > { %v926_v50 = vpop.f32.mrf.mxu1 }
 0x20a   : > { %v639_v52 = vmax.f32 %v926_v50, 0.0 }
 0x20b   : > { %v612_v53 = vpop.f32.mrf.mxu1 }
 0x20c   : > { %v648_v54 = vpack.c.bf16 %v639_v52, %v638_v51  ;;  %v637_v55 = vmax.f32 %v612_v53, 0.0 }
 0x20e   : > { %v674_v56 = vsel %vm502_vm0, %v648_v54, 0  ;;  %v647_v58 = vpack.c.bf16 %v637_v55, %v636_v57 }
 0x20f   : > { %928 = vmatpush3.bf16.xpose.msra.mxu1 %v674_v56 }
 0x210   : > { %929 = vmatprep.subr.bf16.mxu1 %v1098_v29  ;;  %v671_v60 = vsel %vm502_vm0, %v647_v58, 0 }
 0x217   : > { %930 = vmatpush3.bf16.xpose.msra.mxu1 %v671_v60 }
 0x218   : > { %931 = vmatprep.subr.bf16.mxu1 %v1098_v29 }
 0x21f   : > { %932 = vmatpush3.bf16.xpose.msra.mxu1 %v668_v0 }
 0x220   : > { %933 = vmatprep.subr.bf16.mxu1 %v1098_v29 }
 0x227   : > { %934 = vmatpush3.bf16.xpose.msra.mxu1 %v665_v4 }
 0x228   : > { %935 = vmatprep.subr.bf16.mxu1 %v1098_v29 }
 0x22f   : > { %936 = vmatpush3.bf16.xpose.msra.mxu1 %v662_v8 }
 0x230   : > { %937 = vmatprep.subr.bf16.mxu1 %v1098_v29 }
 0x237   : > { %938 = vmatpush3.bf16.xpose.msra.mxu1 %v659_v11 }
 0x238   : > { %939 = vmatprep.subr.bf16.mxu1 %v1098_v29 }
 0x23f   : > { %940 = vmatpush3.bf16.xpose.msra.mxu1 %v656_v12 }
 0x240   : > { %941 = vmatprep.subr.bf16.mxu1 %v1098_v29 }
 0x247   : > { %942 = vmatpush3.bf16.xpose.msra.mxu1 %v653_v13 }
 0x24e   : > { %944 = vmatmul.mubr.msk.bf16.vlgmr.msra.gmra.mxu1 %vm502_vm0, %v640_v14 }
 0x30e   : > { %v710_v15 = vpop.f32.mrf.mxu1 }
 0x30f   : > { %716 = vst [vmem:[%s247_s7] sm:$0x1] %v710_v15 }
 0x310   : > { %v945_v16 = vpop.f32.mrf.mxu1 }
 0x311   : > { %1042 = shalt.err (!%p1039_p12)
}
 0x312   : > { %s1043_s15 = scalar_lea.hbm %s1331_s9, 16  ;;  %s1047_s16 = scalar_lea.hbm %s1377_s5, 32 }
 0x313   : > { %p1044_p0 = scmp.ne.s32.totalorder %s1331_s9, %s1043_s15  ;;  %p1048_p2 = scmp.lt.s32.totalorder %s1331_s9, %s1377_s5 }
 0x314   : > { %p1049_p4 = scmp.lt.s32.totalorder %s1047_s16, %s1043_s15 }
 0x315   : > { %p1045_p1 = pnand %p1044_p0, %p1175_p9 }
 0x316   : > { %p1050_p5 = por %p1049_p4, %p1048_p2 }
 0x317   : > { %p1046_p3 = pneg %p1045_p1 }
 0x319   : > { %p1051_p6 = pnand %p1050_p5, %p1046_p3 }
 0x31b   : > { %1054 = shalt.err (!%p1051_p6)
}
 0x31c   : > { %948 = dma.vmem_to_hbm [thread:$0]  (%p1175_p9), %s1326_s10, 16, %s1331_s9, %s718_s11   ;;  %v713_v17 = vpop.f32.mrf.mxu1 }
 0x31e   : > { %v946_v18 = vpop.f32.mrf.mxu1 }
 0x31f PF: > { %s742_s7 = sand.u32 1, %s1081_s18   ;;  %p1382_p10 = scmp.ne.s32.totalorder %s1381_s30, 0 }
 0x320   : > { %p1383_p11 = scmp.ge.s32.totalorder %s1093_s21, 2  ;;  %s743_s12 = scalar_lea.sflag [#allocation4], %s742_s7 }
 0x322   : > { %p951_p13 = pnand %p1383_p11, %p1382_p10 }
 0x324   : > { %p952_p7 = pneg %p951_p13 }
 0x326   : > { %1076 = dma.done.wait (%p952_p7), %s743_s12, 16  }
 0x327   : > { %1078 = vsyncadd (%p952_p7), %s743_s12, 4294967280  ;;  %p18_p9 = scmp.ge.s32.totalorder %s1156_s24, 4   ;;  %s1384_s18 = smov %s1085_s19 }
 0x328   : > { %s1385_s19 = smov %s1089_s20  ;;  %s1386_s20 = smov %s1168_s27 }
 0x329   : > { %s1387_s21 = smov %s1156_s24  ;;  %20 = sbr.rel (!%p18_p9) target bundleno = 5 (0x5), region = 85 }
 0x32e   :  { %747 = vsyncpa [#allocation3], 1 }
 0x32f   :  { %749 = vsyncpa [#allocation3 + $0x1], 1 }
 0x330   :  { %750 = vsyncpa [#allocation4], 1 }
 0x331   :  { %752 = vsyncpa [#allocation4 + $0x1], 1 }

</bundles_post_ra>
